<compile_context>
chip_gen: v7x
topology: tpu7x:2x2x1
jax: 0.10.0
libtpu: 0.0.40
codegen_flags: <defaults>
</compile_context>

<pallas_src>
import jax
import jax.numpy as jnp
from jax.experimental import pallas as pl
from jax.experimental.pallas import tpu as pltpu


def _round_up(x, m):
    return (x + m - 1) // m * m


def _vmem_capacity_bytes():
    try:
        return int(pltpu.get_tpu_info().vmem_capacity_bytes)
    except Exception:
        return 64 * 1024 * 1024  # conservative: v7x per-TensorCore VMEM


def _sublane_multiple(dtype):
    # f32 -> 8, bf16/f16 -> 16, int8/fp8 -> 32 (sub-32-bit dtypes pack along sublanes)
    return {4: 8, 2: 16, 1: 32}.get(jnp.dtype(dtype).itemsize, 8)


def _working_set(tm, tn, tk, x_b, w_b, o_b, with_acc):
    """Double-buffered VMEM working set (bytes) for one grid step."""
    ws = 2 * (tm * tk * x_b + tk * tn * w_b + tn * 4 + tm * tn * o_b)
    if with_acc:
        ws += tm * tn * 4
    return ws


def _select_tiles(m, k_pad, n_pad, x_b, w_b, o_b, sub, budget):
    """Pick (tm, tn, tk, single_k) under a VMEM byte budget."""
    m_r = _round_up(m, sub)
    tm_cands = sorted({min(512, m_r), min(256, m_r), min(128, m_r)}, reverse=True)
    tn_cands = sorted(
        {c for c in (1024, 512, 256, 128) if n_pad % c == 0}
        | ({n_pad} if n_pad <= 1024 else set()),
        reverse=True,
    )
    tk_cands = sorted({c for c in (2048, 1024, 512, 256, 128) if k_pad % c == 0},
                      reverse=True)

    def pick():
        # Prefer collapsing K into a single tile: no accumulator RMW, no K loop.
        for tm in tm_cands:
            for tn in tn_cands:
                if _working_set(tm, tn, k_pad, x_b, w_b, o_b, False) <= budget:
                    return tm, tn, k_pad, True
        # Fall back to K tiling with a persistent f32 accumulator.
        for tm in tm_cands:
            for tn in tn_cands:
                for tk in tk_cands:
                    if _working_set(tm, tn, tk, x_b, w_b, o_b, True) <= budget:
                        return tm, tn, tk, False
        return tm_cands[-1], 128, min(tk_cands, default=128), False

    tm, tn, tk, single_k = pick()

    # Dual-TensorCore (v7x): expose >= 2 parallel blocks when there is enough work,
    # otherwise one core idles. Shrinking tiles only reduces the working set.
    m_pad = _round_up(m, tm)
    if (m_pad // tm) * (n_pad // tn) < 2:
        tn2 = next((c for c in tn_cands if n_pad // c >= 2), None)
        if tn2 is not None:
            tn = tn2
        elif m >= 256:
            tm = _round_up((m + 1) // 2, sub)

    return tm, tn, tk, single_k


def _mlp_kernel_single_k(x_ref, w_ref, b_ref, o_ref):
    # Whole K in one tile: MXU matmul + f32 bias epilogue, direct lane-dense store.
    o_ref[...] = (
        jnp.dot(x_ref[...], w_ref[...], preferred_element_type=jnp.float32)
        + b_ref[...]
    ).astype(o_ref.dtype)


def _mlp_kernel_multi_k(x_ref, w_ref, b_ref, o_ref, acc_ref):
    k = pl.program_id(2)
    p = jnp.dot(x_ref[...], w_ref[...], preferred_element_type=jnp.float32)

    @pl.when(k == 0)
    def _():
        acc_ref[...] = p  # write-on-first-step: no zero-init store

    @pl.when(k > 0)
    def _():
        acc_ref[...] += p

    @pl.when(k == pl.num_programs(2) - 1)
    def _():
        o_ref[...] = (acc_ref[...] + b_ref[...]).astype(o_ref.dtype)


def prepare_linear_params(weight, bias):
    """One-time parameter prep (hoisted out of the per-call path).

    weight: (num_o, num_i) PyTorch layout; bias: (num_o,).
    Returns (w_t, b2d, num_o):
      w_t : (K_pad, N_pad) transposed + zero-padded to multiples of 128,
      b2d : (1, N_pad)     zero-padded f32 bias row (plain add in the epilogue).
    """
    num_o, num_i = weight.shape
    k_pad = _round_up(num_i, 128)
    n_pad = _round_up(num_o, 128)
    w_t = jnp.zeros((k_pad, n_pad), weight.dtype).at[:num_i, :num_o].set(weight.T)
    b2d = jnp.zeros((1, n_pad), jnp.float32).at[0, :num_o].set(bias.astype(jnp.float32))
    return w_t, b2d, num_o


def mlp_forward(x, w_t_padded, b2d_padded, num_o):
    """x: (..., num_i); w_t_padded: (K_pad, N_pad); b2d_padded: (1, N_pad) f32."""
    *lead, num_i = x.shape
    k_pad, n_pad = w_t_padded.shape

    x2d = x.reshape(-1, num_i)
    m = x2d.shape[0]

    x_b = jnp.dtype(x.dtype).itemsize
    w_b = jnp.dtype(w_t_padded.dtype).itemsize
    o_b = x_b
    sub = _sublane_multiple(x.dtype)

    vmem_cap = _vmem_capacity_bytes()
    # ~48 MiB on v7x (64 MiB/TC), up to ~96 MiB on v5e/v6e (128 MiB VMEM).
    budget = max(min(vmem_cap - (16 << 20), 96 << 20), 24 << 20)

    tm, tn, tk, single_k = _select_tiles(m, k_pad, n_pad, x_b, w_b, o_b, sub, budget)
    m_pad = _round_up(m, tm)
    m_blocks, n_blocks = m_pad // tm, n_pad // tn

    # Fast path: skip the host-side padded copy of x when no padding is needed.
    if m == m_pad and num_i == k_pad:
        x_p = x2d
    else:
        # TODO(synk): mask the M-tail in-kernel instead of materializing a padded copy.
        x_p = jnp.zeros((m_pad, k_pad), x.dtype).at[:m, :num_i].set(x2d)

    ws = _working_set(tm, tn, tk, x_b, w_b, o_b, not single_k)
    vmem_limit = int(max(min(ws + (8 << 20), vmem_cap - (4 << 20)), 16 << 20))

    # Truthful cost estimate: padded compute, weight re-streamed once per M block.
    flops = 2 * m_pad * k_pad * n_pad
    bytes_accessed = (m_pad * k_pad * x_b
                      + m_blocks * k_pad * n_pad * w_b
                      + n_pad * 4
                      + m_pad * n_pad * o_b)
    cost = pl.CostEstimate(flops=flops, transcendentals=0,
                           bytes_accessed=bytes_accessed)

    if single_k:
        out = pl.pallas_call(
            _mlp_kernel_single_k,
            out_shape=jax.ShapeDtypeStruct((m_pad, n_pad), x.dtype),
            grid_spec=pltpu.PrefetchScalarGridSpec(
                num_scalar_prefetch=0,
                grid=(m_blocks, n_blocks),
                in_specs=[
                    pl.BlockSpec((tm, k_pad), lambda i, j: (i, 0)),
                    pl.BlockSpec((k_pad, tn), lambda i, j: (0, j)),
                    pl.BlockSpec((1, tn), lambda i, j: (0, j)),
                ],
                out_specs=pl.BlockSpec((tm, tn), lambda i, j: (i, j)),
            ),
            compiler_params=pltpu.CompilerParams(
                dimension_semantics=("parallel", "parallel"),
                vmem_limit_bytes=vmem_limit,
            ),
            cost_estimate=cost,
        )(x_p, w_t_padded, b2d_padded)
    else:
        out = pl.pallas_call(
            _mlp_kernel_multi_k,
            out_shape=jax.ShapeDtypeStruct((m_pad, n_pad), x.dtype),
            grid_spec=pltpu.PrefetchScalarGridSpec(
                num_scalar_prefetch=0,
                grid=(m_blocks, n_blocks, k_pad // tk),
                in_specs=[
                    pl.BlockSpec((tm, tk), lambda i, j, k: (i, k)),
                    pl.BlockSpec((tk, tn), lambda i, j, k: (k, j)),
                    pl.BlockSpec((1, tn), lambda i, j, k: (0, j)),
                ],
                out_specs=pl.BlockSpec((tm, tn), lambda i, j, k: (i, j)),
                scratch_shapes=[pltpu.VMEM((tm, tn), jnp.float32)],
            ),
            compiler_params=pltpu.CompilerParams(
                dimension_semantics=("parallel", "parallel", "arbitrary"),
                vmem_limit_bytes=vmem_limit,
            ),
            cost_estimate=cost,
        )(x_p, w_t_padded, b2d_padded)

    return out[:m, :num_o].reshape(*lead, num_o)


if __name__ == "__main__":
    key = jax.random.PRNGKey(0)
    k_x, k_w, k_b = jax.random.split(key, 3)

    batch, seq, num_i, num_o = 2, 8, 32, 64

    # Deterministic parameter init (Kaiming-uniform-like bounds, as in nn.Linear)
    bound = 1.0 / jnp.sqrt(num_i)
    weight = jax.random.uniform(k_w, (num_o, num_i), jnp.float32, -bound, bound)
    bias = jax.random.uniform(k_b, (num_o,), jnp.float32, -bound, bound)

    x = jax.random.normal(k_x, (batch, seq, num_i), jnp.float32)

    # One-time param prep (transpose + pad + f32 bias), then the kernel call.
    w_t, b2d, n_out = prepare_linear_params(weight, bias)
    y = mlp_forward(x, w_t, b2d, n_out)
    y = jax.block_until_ready(y)

    # Reference check in plain JAX (same math as torch.nn.Linear)
    y_ref = x @ weight.T + bias
    assert y.shape == (batch, seq, num_o)
    assert jnp.allclose(y, y_ref, atol=1e-5, rtol=1e-5)

    print("KERNEL_OK")
</pallas_src>

<mosaic_0001>
module attributes {stable_mosaic.version = 11 : i64} {
  func.func @_mlp_kernel_single_k(%arg0: i32, %arg1: i32, %arg2: memref<16x128xf32, #tpu.memory_space<vmem>>, %arg3: memref<128x128xf32, #tpu.memory_space<vmem>>, %arg4: memref<1x128xf32, #tpu.memory_space<vmem>>, %arg5: memref<16x128xf32, #tpu.memory_space<vmem>>) attributes {dimension_semantics = [#tpu.dimension_semantics<parallel>, #tpu.dimension_semantics<parallel>], iteration_bounds = array<i64: 1, 1>, scalar_prefetch = 0 : i64, scratch_operands = 0 : i64, tpu.core_type = #tpu.core_type<tc>, window_params = [{transform_indices = @transform_0, window_bounds = array<i64: 16, 128>}, {transform_indices = @transform_1, window_bounds = array<i64: 128, 128>}, {transform_indices = @transform_2, window_bounds = array<i64: 1, 128>}, {transform_indices = @transform_3, window_bounds = array<i64: 16, 128>}]} {
    %c0 = arith.constant 0 : index
    %c0_0 = arith.constant 0 : index
    %0 = vector.load %arg2[%c0, %c0_0] : memref<16x128xf32, #tpu.memory_space<vmem>>, vector<16x128xf32>
    %c0_1 = arith.constant 0 : index
    %c0_2 = arith.constant 0 : index
    %1 = vector.load %arg3[%c0_1, %c0_2] : memref<128x128xf32, #tpu.memory_space<vmem>>, vector<128x128xf32>
    %cst = arith.constant dense<0.000000e+00> : vector<16x128xf32>
    %2 = tpu.matmul %0, %1, %cst {dimension_numbers = #tpu.dot_dimension_numbers<[1], [0], [0], [1], [0, 0, 1, 1], [], []>} : vector<16x128xf32>, vector<128x128xf32>, vector<16x128xf32> -> vector<16x128xf32>
    %c0_3 = arith.constant 0 : index
    %c0_4 = arith.constant 0 : index
    %3 = vector.load %arg4[%c0_3, %c0_4] : memref<1x128xf32, #tpu.memory_space<vmem>>, vector<1x128xf32>
    %4 = vector.broadcast %3 : vector<1x128xf32> to vector<16x128xf32>
    %5 = arith.addf %2, %4 : vector<16x128xf32>
    %c0_5 = arith.constant 0 : index
    %c0_6 = arith.constant 0 : index
    %6 = vector.load %arg5[%c0_5, %c0_6] : memref<16x128xf32, #tpu.memory_space<vmem>>, vector<16x128xf32>
    tpu.vector_store %arg5[%c0_5, %c0_6], %5 {strides = array<i32>} : memref<16x128xf32, #tpu.memory_space<vmem>>, vector<16x128xf32>,
    return
  }
  func.func @transform_0(%arg0: i32, %arg1: i32) -> (i32, i32) {
    %c0_i32 = arith.constant 0 : i32
    %c0_i32_0 = arith.constant 0 : i32
    return %arg0, %c0_i32 : i32, i32
  }
  func.func @transform_1(%arg0: i32, %arg1: i32) -> (i32, i32) {
    %c0_i32 = arith.constant 0 : i32
    %c0_i32_0 = arith.constant 0 : i32
    return %c0_i32, %arg1 : i32, i32
  }
  func.func @transform_2(%arg0: i32, %arg1: i32) -> (i32, i32) {
    %c0_i32 = arith.constant 0 : i32
    %c0_i32_0 = arith.constant 0 : i32
    return %c0_i32, %arg1 : i32, i32
  }
  func.func @transform_3(%arg0: i32, %arg1: i32) -> (i32, i32) {
    %c0_i32 = arith.constant 0 : i32
    return %arg0, %arg1 : i32, i32
  }
}

</mosaic_0001>

<bundles_post_ra>
// kernel: tpu_custom_call.1
= control target key start
LH: loop header
LB: loop body
LE: loop exit
PB: predicated region body
PF: predicated region fallthrough
CT: control target
= control target key end

     0   :  { %8 = vsyncpa [#allocation3], 0  ;;  %s399_s0 = inlined_call_operand.hbm [shape: f32[16,128], index: 0, kind: input, shape index: {}]   ;;  %s400_s1 = inlined_call_operand.hbm [shape: f32[128,128], index: 1, kind: input, shape index: {}]   ;;  %s401_s2 = inlined_call_operand.vmem [shape: f32[1,128], index: 2, kind: input, shape index: {}]   ;;  %s402_s3 = inlined_call_operand.hbm [shape: f32[16,128], index: 3, kind: output, shape index: {}]  }
   0x1   :  { %9 = vsyncpa [#allocation6], 0 }
   0x2   :  { %10 = vsyncpa [#allocation4], 0  ;;  %s326_s12 = smov [#allocation2]   ;;  %s254_s16 = scalar_lea.hbm %s399_s0, 256 }
   0x3   :  { %s16_s13 = sshll.u32 %s326_s12, 4  ;;  %p255_p0 = scmp.ne.s32.totalorder %s399_s0, %s254_s16  ;;  %s17_s13 = int_to_ptr.vmem [resolvable:$true] %s16_s13 }
   0x4   :  { %p258_p1 = scmp.lt.u32.totalorder %s254_s16, %s399_s0 }
   0x6   :  { %p260_p2 = pnand %p258_p1, %p255_p0 }
   0x8   :  { %263 = shalt.err (!%p260_p2)
}
   0x9   :  { %s264_s21 = scalar_lea.vmem %s17_s13, 256  ;;  %p269_p4 = scmp.lt.s32.totalorder %s17_s13, %s17_s13 }
   0xa   :  { %p265_p3 = scmp.ne.s32.totalorder %s17_s13, %s264_s21  ;;  %p270_p5 = scmp.lt.s32.totalorder %s264_s21, %s264_s21 }
   0xc   :  { %p271_p6 = por %p270_p5, %p269_p4 }
   0xe   :  { %p272_p7 = pnand %p271_p6, %p265_p3 }
  0x10   :  { %275 = shalt.err (!%p272_p7)
}
  0x11   :  { %s327_s22 = smov 128   ;;  %s328_s23 = smov 8  }
  0x12   :  { %22 = dma.hbm_to_vmem [thread:$0]  %s399_s0, 256, %s17_s13, [#allocation3], %s327_s22, %s327_s22, %s328_s23  }
  0x13   :  { %s329_s26 = smov [#allocation5]   ;;  %s276_s30 = scalar_lea.hbm %s400_s1, 2048 }
  0x14   :  { %s28_s27 = sshll.u32 %s329_s26, 4  ;;  %p277_p8 = scmp.ne.s32.totalorder %s400_s1, %s276_s30  ;;  %s29_s27 = int_to_ptr.vmem [resolvable:$true] %s28_s27 }
  0x15   :  { %p280_p9 = scmp.lt.u32.totalorder %s276_s30, %s400_s1 }
  0x17   :  { %p282_p10 = pnand %p280_p9, %p277_p8 }
  0x19   :  { %285 = shalt.err (!%p282_p10)
}
  0x1a   :  { %s286_s8 = scalar_lea.vmem %s29_s27, 2048  ;;  %p291_p12 = scmp.lt.s32.totalorder %s29_s27, %s29_s27 }
  0x1b   :  { %p287_p11 = scmp.ne.s32.totalorder %s29_s27, %s286_s8  ;;  %p292_p13 = scmp.lt.s32.totalorder %s286_s8, %s286_s8 }
  0x1d   :  { %p293_p0 = por %p292_p13, %p291_p12 }
  0x1f   :  { %p294_p1 = pnand %p293_p0, %p287_p11 }
  0x21   :  { %297 = shalt.err (!%p294_p1)
}
  0x22   :  { %34 = dma.hbm_to_vmem [thread:$0]  %s400_s1, 2048, %s29_s27, [#allocation6], %s327_s22, %s327_s22, %s328_s23  }
  0x23   :  { %320 = dma.done.wait [#allocation3], 256  }
  0x24   :  { %321 = vsyncadd [#allocation3], 4294967040 }
  0x25   :  { %322 = dma.done.wait [#allocation6], 2048  }
  0x26   :  { %323 = vsyncadd [#allocation6], 4294965248  ;;  %v45_v0 = vld [vmem:[#allocation5] sm:$0xff]  ;;  %v46_v1 = vld [vmem:[#allocation5 + $0x8] sm:$0xff]  ;;  %s330_s11 = smov [#allocation7]  }
  0x27   :  { %v47_v2 = vld [vmem:[#allocation5 + $0x10] sm:$0xff]  ;;  %v217_v3 = vpack.c.bf16 %v46_v1, %v45_v0  ;;  %v48_v4 = vld [vmem:[#allocation5 + $0x18] sm:$0xff]  ;;  %v49_v6 = vld [vmem:[#allocation5 + $0x20] sm:$0xff]  ;;  %s150_s12 = sshll.u32 %s330_s11, 4  ;;  %s151_s12 = int_to_ptr.vmem [resolvable:$true] %s150_s12 }
  0x28   :  { %v221_v5 = vpack.c.bf16 %v48_v4, %v47_v2  ;;  %v50_v7 = vld [vmem:[#allocation5 + $0x28] sm:$0xff]  ;;  %v43_v9 = vld [vmem:[#allocation2] sm:$0xff]  ;;  %v52_v11 = vld [vmem:[#allocation5 + $0x38] sm:$0xff]  ;;  %s298_s13 = scalar_lea.vmem %s151_s12, 256  ;;  %p303_p3 = scmp.lt.s32.totalorder %s151_s12, %s151_s12 }
  0x29   :  { %218 = vmatprep.subr.bf16.mxu0 %v217_v3  ;;  %v225_v8 = vpack.c.bf16 %v50_v7, %v49_v6  ;;  %v51_v10 = vld [vmem:[#allocation5 + $0x30] sm:$0xff]  ;;  %214 = vmatprep.mubr.f32.mxu0 %v43_v9  ;;  %v53_v13 = vld [vmem:[#allocation5 + $0x40] sm:$0xff]  ;;  %v54_v14 = vld [vmem:[#allocation5 + $0x48] sm:$0xff]  ;;  %p299_p2 = scmp.ne.s32.totalorder %s151_s12, %s298_s13  ;;  %p304_p4 = scmp.lt.s32.totalorder %s298_s13, %s298_s13 }
  0x2a   :  { %220 = vmatpush3.bf16.msra.mxu0 %v217_v3  ;;  %v229_v12 = vpack.c.bf16 %v52_v11, %v51_v10  ;;  %v233_v15 = vpack.c.bf16 %v54_v14, %v53_v13  ;;  %v55_v16 = vld [vmem:[#allocation5 + $0x50] sm:$0xff]  ;;  %v56_v17 = vld [vmem:[#allocation5 + $0x58] sm:$0xff]  ;;  %v57_v19 = vld [vmem:[#allocation5 + $0x60] sm:$0xff] }
  0x2b   :  { %222 = vmatprep.subr.bf16.mxu0 %v221_v5  ;;  %v237_v18 = vpack.c.bf16 %v56_v17, %v55_v16  ;;  %v58_v20 = vld [vmem:[#allocation5 + $0x68] sm:$0xff]  ;;  %v59_v22 = vld [vmem:[#allocation5 + $0x70] sm:$0xff]  ;;  %v60_v23 = vld [vmem:[#allocation5 + $0x78] sm:$0xff]  ;;  %p305_p5 = por %p304_p4, %p303_p3 }
  0x2c   :  { %v241_v21 = vpack.c.bf16 %v58_v20, %v57_v19  ;;  %v245_v24 = vpack.c.bf16 %v60_v23, %v59_v22  ;;  %v44_v25 = vld [vmem:[#allocation2 + $0x8] sm:$0xff]  ;;  %v163_v26 = vld [vmem:[%s401_s2] ss:$0 sm:$0xff] }
  0x2d   :  { %p306_p6 = pnand %p305_p5, %p299_p2 }
  0x2e   :  { %224 = vmatpush3.bf16.msra.mxu0 %v221_v5 }
  0x2f   :  { %226 = vmatprep.subr.bf16.mxu0 %v225_v8 }
  0x32   :  { %228 = vmatpush3.bf16.msra.mxu0 %v225_v8 }
  0x33   :  { %230 = vmatprep.subr.bf16.mxu0 %v229_v12 }
  0x36   :  { %232 = vmatpush3.bf16.msra.mxu0 %v229_v12 }
  0x37   :  { %234 = vmatprep.subr.bf16.mxu0 %v233_v15 }
  0x3a   :  { %236 = vmatpush3.bf16.msra.mxu0 %v233_v15 }
  0x3b   :  { %238 = vmatprep.subr.bf16.mxu0 %v237_v18 }
  0x3e   :  { %240 = vmatpush3.bf16.msra.mxu0 %v237_v18 }
  0x3f   :  { %242 = vmatprep.subr.bf16.mxu0 %v241_v21 }
  0x42   :  { %244 = vmatpush3.bf16.msra.mxu0 %v241_v21 }
  0x43   :  { %246 = vmatprep.subr.bf16.mxu0 %v245_v24 }
  0x46   :  { %248 = vmatpush3.bf16.msra.mxu0 %v245_v24 }
  0x49   :  { %215 = vmatmul.mubr.f32.vlgmr.msra.gmra.mrb[0].mxu0 %v44_v25 }
 0x11c   :  { %v216_v27 = vpop.f32.mrb[0].mxu0 }
 0x11d   :  { %v140_v28 = vadd.f32 %v216_v27, %v163_v26  ;;  %v134_v29 = vpop.f32.mrb[1].mxu0 }
 0x11e   :  { %v135_v30 = vadd.f32 %v163_v26, %v134_v29 }
 0x11f   :  { %144 = vst [vmem:[#allocation7 + $0x8] sm:$0xff] %v140_v28 }
 0x120   :  { %143 = vst [vmem:[#allocation7] sm:$0xff] %v135_v30 }
 0x121   :  { %309 = shalt.err (!%p306_p6)
}
 0x122   :  { %s310_s2 = scalar_lea.hbm %s402_s3, 256 }
 0x123   :  { %p311_p7 = scmp.ne.s32.totalorder %s402_s3, %s310_s2  ;;  %p314_p8 = scmp.lt.u32.totalorder %s310_s2, %s402_s3 }
 0x125   :  { %p316_p9 = pnand %p314_p8, %p311_p7 }
 0x127   :  { %319 = shalt.err (!%p316_p9)
}
 0x128   :  { %156 = dma.vmem_to_hbm [thread:$0]  %s151_s12, 256, %s402_s3, [#allocation4], %s327_s22, %s327_s22, %s328_s23  }
 0x129   :  { %324 = dma.done.wait [#allocation4], 256  }
 0x12a   :  { %325 = vsyncadd [#allocation4], 4294967040 }
 0x12b   :  { %160 = vsyncpa [#allocation3], 1 }
 0x12c   :  { %161 = vsyncpa [#allocation6], 1 }
 0x12d   :  { %162 = vsyncpa [#allocation4], 1 }

</bundles_post_ra>
